<compile_context>
chip_gen: v7x
topology: tpu7x:2x2x1
jax: 0.10.0
libtpu: 0.0.40
codegen_flags: <defaults>
</compile_context>

<pallas_src>
import jax
import jax.numpy as jnp
from jax import lax
from jax.experimental import pallas as pl
from jax.experimental.pallas import tpu as pltpu


def _fcuup_kernel(x_ref, w_ref, b_ref, o_ref):
    # x_ref: (TM, C_in)    bf16 t==0 tokens, natural (token, channel) layout
    # w_ref: (C_out, C_in) bf16 1x1x1 conv weight with BN scale folded in
    # b_ref: (C_out, 1)    f32  folded bias = (conv_b - mean) * scale + beta
    # o_ref: (C_out, TM)   bf16 lane-dense output tile
    #
    # W @ X^T: contraction over the channel axis of both operands. Mosaic does
    # the operand layout swap in VMEM/XLU, so no HBM transpose in the wrapper,
    # and the token axis (large) stays on lanes for the store.
    y = lax.dot_general(
        w_ref[...], x_ref[...],
        dimension_numbers=(((1,), (1,)), ((), ())),
        preferred_element_type=jnp.float32)
    y = y + b_ref[...]                          # bias broadcast along lanes
    o_ref[...] = jnp.maximum(y, 0.0).astype(o_ref.dtype)


def _round_up(x, m):
    return ((x + m - 1) // m) * m


def _pick_token_tile(hw, c_in, c_out, token_tile=None):
    """Token-tile size (lane dim of the output block).

    Derived from VMEM capacity (v5e/v6e: 128 MiB, v7x: 64 MiB) so that one
    double-buffered step stays well inside the default scoped VMEM limit on
    every generation.  No forced ">= 2 grid steps" split: v5e/v6e are single
    TensorCore, and on v7x the batch grid axis already provides parallel
    steps for megacore sharding.
    """
    if token_tile is None:
        try:
            info = pltpu.get_tpu_info()
            vmem = int(getattr(info, "vmem_capacity_bytes", 64 * 1024 * 1024))
        except Exception:                      # not on TPU / API unavailable
            vmem = 64 * 1024 * 1024
        budget = vmem // 8
        cin_pad = _round_up(c_in, 128)         # lane padding of the bf16 input tile
        cout_pad = _round_up(c_out, 16)        # sublane padding of the bf16 output tile
        per_tok = 2 * 2 * (cin_pad + cout_pad)  # 2 buffers x 2 bytes x (in + out)
        tm = max(128, budget // max(per_tok, 1))
        tm = min(tm, 8192)                     # diminishing returns past ~8K tokens
    else:
        tm = int(token_tile)
    if tm >= hw:
        return hw                              # one full block per batch element
    return max(128, (tm // 128) * 128)         # lane-dense, unmasked stores


def fcuup_forward(x, H, W, params, *, clip_len, up_stride, token_tile=None):
    """Pallas implementation of FCUUp.forward(x, H, W).

    Returns (B, C_out, 1, H*up_stride, W*up_stride) float32, matching PyTorch.
    BatchNorm is applied in inference mode (running stats folded in).
    """
    B, N, C_in = x.shape
    assert N == 1 + H * W * clip_len, "token count must be 1 + H*W*clip_len"
    s = up_stride
    HW = H * W

    # F.interpolate(..., size=(1, H*s, W*s), mode='nearest') keeps only the
    # t == 0 depth slice and everything upstream is pointwise, so only the
    # t == 0 tokens are ever read.  Single cheap XLA pass: strided slice +
    # bf16 cast in the natural (batch, token, channel) layout -- no transpose.
    tokens = x[:, 1::clip_len, :].astype(jnp.bfloat16)            # (B, HW, C_in)

    # Fold inference BatchNorm3d into the 1x1x1 conv weight; keep bias in f32.
    conv_w = params["conv_w"].astype(jnp.float32)                 # (C_out, C_in)
    C_out = conv_w.shape[0]
    inv_std = lax.rsqrt(params["bn_var"].astype(jnp.float32) + params["bn_eps"])
    scale = params["bn_gamma"].astype(jnp.float32) * inv_std      # (C_out,)
    w_f = (conv_w * scale[:, None]).astype(jnp.bfloat16)          # (C_out, C_in)
    bias = ((params["conv_b"].astype(jnp.float32)
             - params["bn_mean"].astype(jnp.float32)) * scale
            + params["bn_beta"].astype(jnp.float32)).reshape(C_out, 1)

    tm = _pick_token_tile(HW, C_in, C_out, token_tile)
    n_tiles = pl.cdiv(HW, tm)
    grid = (B, n_tiles)

    # Ragged last tile (if any): the input DMA is clipped to HW rows, the
    # garbage columns it produces never mix into in-bounds columns (the
    # contraction axis C_in is fully in bounds), and the output writeback is
    # clipped to the in-bounds columns of the (B, C_out, HW) array.
    # NOTE: the folded weight / bias have constant index maps so they are
    # fetched once and stay resident; a second buffer for them is negligible
    # here, so pl.Buffered(1) is left as a tuning knob rather than applied.
    out = pl.pallas_call(
        _fcuup_kernel,
        out_shape=jax.ShapeDtypeStruct((B, C_out, HW), jnp.bfloat16),
        grid_spec=pltpu.PrefetchScalarGridSpec(
            num_scalar_prefetch=0,
            grid=grid,
            in_specs=[
                pl.BlockSpec((None, tm, C_in), lambda b, i: (b, i, 0)),   # tokens
                pl.BlockSpec((C_out, C_in), lambda b, i: (0, 0)),         # folded weight
                pl.BlockSpec((C_out, 1), lambda b, i: (0, 0)),            # folded bias
            ],
            out_specs=pl.BlockSpec((None, C_out, tm), lambda b, i: (b, 0, i)),
        ),
        compiler_params=pltpu.CompilerParams(
            dimension_semantics=("parallel", "parallel")),
    )(tokens, w_f, bias)

    # (B, C_out, HW) bf16 -> (B, C_out, 1, H*s, W*s) f32.  Nearest-neighbor
    # upsample as one fused broadcast + cast + reshape pass (no transpose:
    # the kernel output is already channel-first per batch element).
    y = out.reshape(B, C_out, H, 1, W, 1)
    y = jnp.broadcast_to(y, (B, C_out, H, s, W, s)).astype(jnp.float32)
    y = y.reshape(B, C_out, H * s, W * s)
    return y[:, :, None, :, :]                    # (B, C_out, 1, H*s, W*s)


def fcuup_reference(x, H, W, params, *, clip_len, up_stride):
    """Pure-JAX reference that literally mirrors the PyTorch forward (f32)."""
    B, N, C = x.shape
    x_r = jnp.transpose(x[:, 1:], (0, 2, 1)).reshape(B, C, -1, clip_len)
    x_r = jnp.transpose(x_r, (0, 1, 3, 2)).reshape(B, C, clip_len, H, W)
    y = jnp.einsum("bcthw,oc->bothw", x_r, params["conv_w"]) \
        + params["conv_b"][None, :, None, None, None]
    inv_std = 1.0 / jnp.sqrt(params["bn_var"] + params["bn_eps"])
    y = (y - params["bn_mean"][None, :, None, None, None]) \
        * (params["bn_gamma"] * inv_std)[None, :, None, None, None] \
        + params["bn_beta"][None, :, None, None, None]
    y = jnp.maximum(y, 0.0)
    y = y[:, :, 0:1, :, :]                        # nearest, output depth 1 -> t=0
    y = jnp.repeat(jnp.repeat(y, up_stride, axis=3), up_stride, axis=4)
    return y


if __name__ == "__main__":
    def make_params(key, c_in, c_out):
        kw, kb, kg, kbe, km, kv = jax.random.split(key, 6)
        return {
            "conv_w": 0.1 * jax.random.normal(kw, (c_out, c_in), jnp.float32),
            "conv_b": 0.1 * jax.random.normal(kb, (c_out,), jnp.float32),
            "bn_gamma": 1.0 + 0.05 * jax.random.normal(kg, (c_out,), jnp.float32),
            "bn_beta": 0.05 * jax.random.normal(kbe, (c_out,), jnp.float32),
            "bn_mean": 0.05 * jax.random.normal(km, (c_out,), jnp.float32),
            "bn_var": jnp.abs(jax.random.normal(kv, (c_out,), jnp.float32)) + 0.5,
            "bn_eps": 1e-6,
        }

    def run_case(key, *, B, H, W, clip_len, inplanes, outplanes, up_stride,
                 token_tile=None):
        kx, kp = jax.random.split(key)
        x = jax.random.normal(
            kx, (B, 1 + H * W * clip_len, inplanes), dtype=jnp.float32)
        params = make_params(kp, inplanes, outplanes)
        fwd = jax.jit(lambda xx, pp: fcuup_forward(
            xx, H, W, pp, clip_len=clip_len, up_stride=up_stride,
            token_tile=token_tile))
        out = jax.block_until_ready(fwd(x, params))
        ref = fcuup_reference(x, H, W, params,
                              clip_len=clip_len, up_stride=up_stride)
        expect = (B, outplanes, 1, H * up_stride, W * up_stride)
        assert out.shape == expect, (out.shape, expect)
        # bf16 tokens / folded weight / intermediate -> relaxed tolerance.
        err = float(jnp.max(jnp.abs(out - ref)))
        assert jnp.allclose(out, ref, atol=3e-2, rtol=3e-2), (
            "mismatch vs reference (max abs err %.3e)" % err)

    key = jax.random.PRNGKey(0)
    k1, k2 = jax.random.split(key)

    # Case 1: module-consistent small shapes (H*W is a multiple of 128).
    run_case(k1, B=2, H=16, W=16, clip_len=4,
             inplanes=32, outplanes=16, up_stride=2)

    # Case 2: ragged last token tile (H*W = 400 with a 128-token tile), odd
    # channel counts and up_stride=3 -- locks in the OOB clipping behaviour.
    run_case(k2, B=1, H=20, W=20, clip_len=2,
             inplanes=64, outplanes=24, up_stride=3, token_tile=128)

    print("KERNEL_OK")
</pallas_src>

<mosaic_0001>
module attributes {stable_mosaic.version = 11 : i64} {
  func.func @_fcuup_kernel(%arg0: i32, %arg1: i32, %arg2: memref<1x256x32xbf16, #tpu.memory_space<vmem>>, %arg3: memref<16x32xbf16, #tpu.memory_space<vmem>>, %arg4: memref<16x1xf32, #tpu.memory_space<vmem>>, %arg5: memref<1x16x256xbf16, #tpu.memory_space<vmem>>) attributes {dimension_semantics = [#tpu.dimension_semantics<parallel>, #tpu.dimension_semantics<parallel>], iteration_bounds = array<i64: 2, 1>, scalar_prefetch = 0 : i64, scratch_operands = 0 : i64, tpu.core_type = #tpu.core_type<tc>, window_params = [{transform_indices = @transform_0, window_bounds = array<i64: 1, 256, 32>}, {pipeline_mode = #tpu.pipeline_mode<synchronous>, transform_indices = @transform_1, window_bounds = array<i64: 16, 32>}, {pipeline_mode = #tpu.pipeline_mode<synchronous>, transform_indices = @transform_2, window_bounds = array<i64: 16, 1>}, {transform_indices = @transform_3, window_bounds = array<i64: 1, 16, 256>}]} {
    %c0 = arith.constant 0 : index
    %c0_0 = arith.constant 0 : index
    %0 = vector.load %arg3[%c0, %c0_0] : memref<16x32xbf16, #tpu.memory_space<vmem>>, vector<16x32xbf16>
    %c0_1 = arith.constant 0 : index
    %c0_2 = arith.constant 0 : index
    %c0_3 = arith.constant 0 : index
    %1 = vector.load %arg2[%c0_1, %c0_2, %c0_3] : memref<1x256x32xbf16, #tpu.memory_space<vmem>>, vector<1x256x32xbf16>
    %2 = vector.shape_cast %1 : vector<1x256x32xbf16> to vector<256x32xbf16>
    %cst = arith.constant dense<0.000000e+00> : vector<16x256xf32>
    %3 = tpu.matmul %0, %2, %cst {dimension_numbers = #tpu.dot_dimension_numbers<[1], [1], [0], [0], [0, 0, 1, 0], [], []>} : vector<16x32xbf16>, vector<256x32xbf16>, vector<16x256xf32> -> vector<16x256xf32>
    %c0_4 = arith.constant 0 : index
    %c0_5 = arith.constant 0 : index
    %4 = vector.load %arg4[%c0_4, %c0_5] : memref<16x1xf32, #tpu.memory_space<vmem>>, vector<16x1xf32>
    %5 = vector.broadcast %4 : vector<16x1xf32> to vector<16x256xf32>
    %6 = arith.addf %3, %5 : vector<16x256xf32>
    %cst_6 = arith.constant 0.000000e+00 : f32
    %7 = vector.broadcast %cst_6 : f32 to vector<16x256xf32>
    %8 = arith.maximumf %6, %7 : vector<16x256xf32>
    %9 = arith.truncf %8 : vector<16x256xf32> to vector<16x256xbf16>
    %c0_7 = arith.constant 0 : index
    %c0_8 = arith.constant 0 : index
    %c0_9 = arith.constant 0 : index
    %10 = vector.load %arg5[%c0_7, %c0_8, %c0_9] : memref<1x16x256xbf16, #tpu.memory_space<vmem>>, vector<1x16x256xbf16>
    %11 = vector.shape_cast %10 : vector<1x16x256xbf16> to vector<16x256xbf16>
    %12 = vector.shape_cast %9 : vector<16x256xbf16> to vector<1x16x256xbf16>
    tpu.vector_store %arg5[%c0_7, %c0_8, %c0_9], %12 {strides = array<i32>} : memref<1x16x256xbf16, #tpu.memory_space<vmem>>, vector<1x16x256xbf16>,
    return
  }
  func.func @transform_0(%arg0: i32, %arg1: i32) -> (i32, i32, i32) {
    %c0_i32 = arith.constant 0 : i32
    %c0_i32_0 = arith.constant 0 : i32
    return %arg0, %arg1, %c0_i32 : i32, i32, i32
  }
  func.func @transform_1(%arg0: i32, %arg1: i32) -> (i32, i32) {
    %c0_i32 = arith.constant 0 : i32
    %c0_i32_0 = arith.constant 0 : i32
    %c0_i32_1 = arith.constant 0 : i32
    return %c0_i32, %c0_i32_0 : i32, i32
  }
  func.func @transform_2(%arg0: i32, %arg1: i32) -> (i32, i32) {
    %c0_i32 = arith.constant 0 : i32
    %c0_i32_0 = arith.constant 0 : i32
    %c0_i32_1 = arith.constant 0 : i32
    return %c0_i32, %c0_i32_0 : i32, i32
  }
  func.func @transform_3(%arg0: i32, %arg1: i32) -> (i32, i32, i32) {
    %c0_i32 = arith.constant 0 : i32
    %c0_i32_0 = arith.constant 0 : i32
    return %arg0, %c0_i32, %arg1 : i32, i32, i32
  }
}

</mosaic_0001>

<bundles_post_ra>
// kernel: _lambda_.1
= control target key start
LH: loop header
LB: loop body
LE: loop exit
PB: predicated region body
PF: predicated region fallthrough
CT: control target
= control target key end

     0   :  { %s691_s12 = smov 0   ;;  %s693_s13 = smov 0   ;;  %s773_s0 = inlined_call_operand.vmem [shape: bf16[2,256,32], index: 0, kind: input, shape index: {}]   ;;  %s774_s1 = inlined_call_operand.vmem [shape: bf16[16,32], index: 1, kind: input, shape index: {}]   ;;  %s775_s2 = inlined_call_operand.vmem [shape: f32[16,1], index: 2, kind: input, shape index: {}]   ;;  %s776_s3 = inlined_call_operand.vmem [shape: bf16[2,16,256], index: 3, kind: output, shape index: {}]  }
   0x1   :  { %s695_s14 = smov 0  }
   0x2 LB: > { %s25_s15 = sadd.s32 1, %s664_s13  ;;  %p546_p0 = scmp.ge.s32.totalorder %s668_s14, 1  ;;  %s668_s14 = sphi %s695_s14, %s13_s14   ;;  %s664_s13 = sphi %s693_s13, %s778_s13   ;;  %s660_s12 = sphi %s691_s12, %s777_s12  }
   0x3   : > { %p27_p1 = scmp.ge.s32.totalorder %s25_s15, 2  ;;  %p158_p2 = scmp.lt.s32.totalorder %s668_s14, 3 }
   0x5   : > { %s780_s15 = smov (%p27_p1, %s25_s15), 0  ;;  %p159_p3 = pnand %p546_p0, %p158_p2 }
   0x6   : > { %p191_p4 = scmp.lt.s32.totalorder (!%p159_p3), %s660_s12, 1  ;;  %v645_v0 = vld [vmem:[%s774_s1] sm:$0xff] (!%p159_p3)   ;;  %vm342_vm0 = vcmask (!%p159_p3), 261120   ;;  %v670_v2 = vmov (!%p159_p3), 0   ;;  %v246_v3 = vld [vmem:[%s775_s2 + $0x8] sm:$0xff] (!%p159_p3) }
   0x7   : > { %162 = sbr.rel (%p159_p3) target bundleno = 305 (0x131), region = 32  ;;  %v245_v1 = vld [vmem:[%s775_s2] sm:$0xff] (!%p159_p3)  ;;  %628 = vset.pattern.permute.xlu0 (!%p159_p3), %v670_v2  ;;  %593 = vmatprep.mubr.msk.bf16.mxu0 (!%p159_p3), %vm342_vm0, %v645_v0 }
   0x8   : > { %249 = vperm.xlu0 (!%p159_p3), %628, %v245_v1  }
   0xc   : > { %254 = vperm.xlu0 (!%p159_p3), %628, %v246_v3  }
   0xe   : > { %s782_s12 = smov (!%p191_p4, %s660_s12), 1 }
   0xf   : > { %s573_s20 = sshll.u32 %s782_s12, 7  ;;  %s574_s26 = sshll.u32 %s782_s12, 4 }
  0x10   : > { %s725_s25 = scalar_lea.vmem %s773_s0, %s573_s20  ;;  %s208_s29 = scalar_lea.vmem %s776_s3, %s574_s26 }
  0x11   : > { %v629_v4 = vld [vmem:[%s725_s25 + $0x40] sm:$0xff]   ;;  %v631_v6 = vld [vmem:[%s725_s25 + $0x48] sm:$0xff]   ;;  %v633_v10 = vld [vmem:[%s725_s25 + $0x50] sm:$0xff]  }
  0x12   : > { %v630_v5 = vld [vmem:[%s725_s25] sm:$0xff]   ;;  %595 = vmatprep.subr.msk.bf16.mxu0 %vm342_vm0, %v629_v4  ;;  %v632_v8 = vld [vmem:[%s725_s25 + $0x8] sm:$0xff]   ;;  %v634_v11 = vld [vmem:[%s725_s25 + $0x10] sm:$0xff]  }
  0x13   : > { %v347_v7 = vsel %vm342_vm0, %v630_v5, 0  ;;  %v350_v9 = vsel %vm342_vm0, %v632_v8, 0  ;;  %v353_v12 = vsel %vm342_vm0, %v634_v11, 0  ;;  %v635_v13 = vld [vmem:[%s725_s25 + $0x58] sm:$0xff]   ;;  %v637_v16 = vld [vmem:[%s725_s25 + $0x60] sm:$0xff]   ;;  %v639_v19 = vld [vmem:[%s725_s25 + $0x68] sm:$0xff]  }
  0x14   : > { %578 = vmatpush3.bf16.xpose.msra.mxu0 %v347_v7  ;;  %v636_v14 = vld [vmem:[%s725_s25 + $0x18] sm:$0xff]   ;;  %v638_v17 = vld [vmem:[%s725_s25 + $0x20] sm:$0xff]   ;;  %v640_v20 = vld [vmem:[%s725_s25 + $0x28] sm:$0xff]  }
  0x15   : > { %596 = vmatprep.subr.msk.bf16.mxu0 %vm342_vm0, %v631_v6  ;;  %v356_v15 = vsel %vm342_vm0, %v636_v14, 0  ;;  %v359_v18 = vsel %vm342_vm0, %v638_v17, 0  ;;  %v362_v21 = vsel %vm342_vm0, %v640_v20, 0  ;;  %v641_v22 = vld [vmem:[%s725_s25 + $0x70] sm:$0xff]   ;;  %v643_v25 = vld [vmem:[%s725_s25 + $0x78] sm:$0xff]  }
  0x16   : > { %v642_v23 = vld [vmem:[%s725_s25 + $0x30] sm:$0xff]   ;;  %v644_v26 = vld [vmem:[%s725_s25 + $0x38] sm:$0xff]  }
  0x17   : > { %v365_v24 = vsel %vm342_vm0, %v642_v23, 0  ;;  %v368_v27 = vsel %vm342_vm0, %v644_v26, 0 }
  0x1c   : > { %580 = vmatpush3.bf16.xpose.msra.mxu0 %v350_v9 }
  0x1d   : > { %597 = vmatprep.subr.msk.bf16.mxu0 %vm342_vm0, %v633_v10 }
  0x24   : > { %582 = vmatpush3.bf16.xpose.msra.mxu0 %v353_v12 }
  0x25   : > { %598 = vmatprep.subr.msk.bf16.mxu0 %vm342_vm0, %v635_v13 }
  0x2c   : > { %584 = vmatpush3.bf16.xpose.msra.mxu0 %v356_v15 }
  0x2d   : > { %599 = vmatprep.subr.msk.bf16.mxu0 %vm342_vm0, %v637_v16 }
  0x34   : > { %586 = vmatpush3.bf16.xpose.msra.mxu0 %v359_v18 }
  0x35   : > { %600 = vmatprep.subr.msk.bf16.mxu0 %vm342_vm0, %v639_v19 }
  0x3c   : > { %588 = vmatpush3.bf16.xpose.msra.mxu0 %v362_v21 }
  0x3d   : > { %601 = vmatprep.subr.msk.bf16.mxu0 %vm342_vm0, %v641_v22 }
  0x44   : > { %590 = vmatpush3.bf16.xpose.msra.mxu0 %v365_v24 }
  0x45   : > { %602 = vmatprep.subr.msk.bf16.mxu0 %vm342_vm0, %v643_v25 }
  0x4c   : > { %592 = vmatpush3.bf16.xpose.msra.mxu0 %v368_v27 }
  0x53   : > { %594 = vmatmul.mubr.msk.bf16.vlgmr.msra.gmra.mrb[0].mxu0 %vm342_vm0, %v645_v0 }
  0x87   : > { %v250_v28 = vpop.permute.xlu0 %249 }
  0x8b   : > { %v255_v32 = vpop.permute.xlu0 %254 }
 0x126   : > { %v428_v29 = vpop.f32.mrb[0].mxu0 }
 0x127   : > { %v429_v30 = vadd.f32 %v428_v29, %v250_v28  ;;  %v430_v31 = vpop.f32.mrb[1].mxu0 }
 0x128   : > { %v431_v33 = vadd.f32 %v430_v31, %v250_v28  ;;  %v432_v34 = vpop.f32.mrb[2].mxu0 }
 0x129   : > { %v437_v35 = vmax.f32 %v429_v30, 0.0  ;;  %v433_v36 = vadd.f32 %v432_v34, %v255_v32  ;;  %v434_v37 = vpop.f32.mrb[3].mxu0 }
 0x12a   : > { %v438_v38 = vmax.f32 %v431_v33, 0.0  ;;  %v435_v39 = vadd.f32 %v434_v37, %v255_v32 }
 0x12b   : > { %v439_v40 = vmax.f32 %v433_v36, 0.0 }
 0x12c   : > { %v575_v41 = vpack.c.bf16 %v438_v38, %v437_v35  ;;  %v440_v42 = vmax.f32 %v435_v39, 0.0 }
 0x12e   : > { %453 = vst [vmem:[%s208_s29] sm:$0xff] %v575_v41  ;;  %v576_v43 = vpack.c.bf16 %v440_v42, %v439_v40 }
 0x130   : > { %454 = vst [vmem:[%s208_s29 + $0x8] sm:$0xff] %v576_v43 }
 0x131 PF: > { %s13_s14 = sadd.s32 1, %s668_s14   ;;  %s777_s12 = smov %s664_s13 }
 0x132   : > { %p10_p5 = scmp.ge.s32.totalorder %s13_s14, 4   ;;  %s778_s13 = smov %s780_s15 }
 0x134   :  { %12 = sbr.rel (!%p10_p5) target bundleno = 2 (0x2), region = 62 }

</bundles_post_ra>
